<compile_context>
chip_gen: v7x
topology: tpu7x:2x2x1
jax: 0.10.0
libtpu: 0.0.40
codegen_flags: <defaults>
</compile_context>

<pallas_src>
import jax
import jax.numpy as jnp
from jax.experimental import pallas as pl
from jax.experimental.pallas import tpu as pltpu


D_IN = 18 * 42          # 756 (Mosaic pads K 756 -> 768 in VMEM for free)
H1 = 42
H2 = 30
N_OUT = 26
N_PAD = 128             # lane-dense width for all hidden/output slabs


def _round_up(n, m):
    return ((n + m - 1) // m) * m


def dynamic_model_kernel(x_ref, w1_ref, b1_ref, w2_ref, b2_ref,
                         w3_ref, b3_ref, out_ref):
    # fc1: cast x to bf16 in-kernel (operands bf16, f32 accumulation on MXU)
    x = x_ref[...].astype(jnp.bfloat16)                          # (TB, 756)
    h1 = jnp.dot(x, w1_ref[...], preferred_element_type=jnp.float32)  # (TB, 128)
    h1 = jnp.maximum(h1 + b1_ref[...], 0.0)                      # lanes 42.. stay 0

    # fc2 + ReLU (f32 — trivial FLOPs, lane-dense)
    h2 = jnp.dot(h1, w2_ref[...], preferred_element_type=jnp.float32)  # (TB, 128)
    h2 = jnp.maximum(h2 + b2_ref[...], 0.0)                      # lanes 30.. stay 0

    # fc3 into a lane-dense (TB, 128) slab; real logits live in lanes 0..25
    logits = jnp.dot(h2, w3_ref[...], preferred_element_type=jnp.float32)
    logits = logits + b3_ref[...]                                # (TB, 128) f32

    # LogSoftmax over the 26 real lanes only: mask padded lanes to -inf first
    lane = jax.lax.broadcasted_iota(jnp.int32, logits.shape, 1)
    masked = jnp.where(lane < N_OUT, logits, -jnp.inf)
    m = jnp.max(masked, axis=-1, keepdims=True)
    shifted = masked - m
    lse = jnp.log(jnp.sum(jnp.exp(shifted), axis=-1, keepdims=True))
    out_ref[...] = shifted - lse                                 # pad lanes -> -inf


def prepare_params(params):
    """One-time packing of PyTorch-equivalent params into kernel layout.

    Returns (w1, b1, w2, b2, w3, b3) padded to 128 lanes; w1 cast to bf16.
    Zero padding is inert: ReLU(0 + 0) = 0 and padded output lanes are masked
    to -inf inside the kernel before the log-softmax reductions.
    """
    w1, b1, w2, b2, w3, b3 = params
    w1_p = jnp.zeros((D_IN, N_PAD), jnp.bfloat16).at[:, :H1].set(w1.astype(jnp.bfloat16))
    b1_p = jnp.zeros((1, N_PAD), jnp.float32).at[:, :H1].set(b1)
    w2_p = jnp.zeros((N_PAD, N_PAD), jnp.float32).at[:H1, :H2].set(w2)
    b2_p = jnp.zeros((1, N_PAD), jnp.float32).at[:, :H2].set(b2)
    w3_p = jnp.zeros((N_PAD, N_PAD), jnp.float32).at[:H2, :N_OUT].set(w3)
    b3_p = jnp.zeros((1, N_PAD), jnp.float32).at[:, :N_OUT].set(b3)
    return (w1_p, b1_p, w2_p, b2_p, w3_p, b3_p)


def _pick_tile(B, tb_max):
    # Multiple of 16 (bf16 sublane packing); aim for >= 2 grid steps (v7x
    # megacore) while keeping per-step overhead amortized; cap at tb_max.
    tb = _round_up(max(pl.cdiv(B, 2), 1), 16)
    return max(16, min(tb_max, tb))


def dynamic_model_forward_slab(x, packed_params, tb_max=512):
    """x: (B, 756) float32.  Returns (B, 128) f32 slab: log-probs in lanes
    0..25, -inf in lanes 26..127.  Preferred (bandwidth-friendly) output."""
    w1, b1, w2, b2, w3, b3 = packed_params
    B = x.shape[0]
    tb = _pick_tile(B, tb_max)
    grid = (pl.cdiv(B, tb),)

    return pl.pallas_call(
        dynamic_model_kernel,
        out_shape=jax.ShapeDtypeStruct((B, N_PAD), jnp.float32),
        grid=grid,
        in_specs=[
            pl.BlockSpec((tb, D_IN), lambda i: (i, 0)),     # x: tiled over batch (f32)
            pl.BlockSpec((D_IN, N_PAD), lambda i: (0, 0)),  # w1 (bf16, resident)
            pl.BlockSpec((1, N_PAD), lambda i: (0, 0)),     # b1
            pl.BlockSpec((N_PAD, N_PAD), lambda i: (0, 0)), # w2
            pl.BlockSpec((1, N_PAD), lambda i: (0, 0)),     # b2
            pl.BlockSpec((N_PAD, N_PAD), lambda i: (0, 0)), # w3
            pl.BlockSpec((1, N_PAD), lambda i: (0, 0)),     # b3
        ],
        out_specs=pl.BlockSpec((tb, N_PAD), lambda i: (i, 0)),
        compiler_params=pltpu.CompilerParams(
            dimension_semantics=("parallel",),
        ),
    )(x, w1, b1, w2, b2, w3, b3)


def dynamic_model_forward(x, packed_params, tb_max=512):
    """Exact module semantics: (B, 26) log-probabilities.  Note: the [:, :26]
    slice is an extra lane-sparse relayout pass; prefer the slab if the
    consumer can index lanes 0..25 itself."""
    slab = dynamic_model_forward_slab(x, packed_params, tb_max=tb_max)
    return slab[:, :N_OUT]


def init_params(key):
    """Deterministic init mirroring nn.Linear default (U[-1/sqrt(fan_in), +])."""
    dims = [(D_IN, H1), (H1, H2), (H2, N_OUT)]
    params = []
    for i, (fan_in, fan_out) in enumerate(dims):
        kw, kb = jax.random.split(jax.random.fold_in(key, i))
        bound = 1.0 / jnp.sqrt(float(fan_in))
        w = jax.random.uniform(kw, (fan_in, fan_out), jnp.float32, -bound, bound)
        b = jax.random.uniform(kb, (1, fan_out), jnp.float32, -bound, bound)
        params.extend([w, b])
    return tuple(params)


def reference_forward(x, params):
    """Pure f32 JAX reference matching the PyTorch module semantics."""
    w1, b1, w2, b2, w3, b3 = params
    h = jnp.maximum(x @ w1 + b1, 0.0)
    h = jnp.maximum(h @ w2 + b2, 0.0)
    logits = h @ w3 + b3
    return jax.nn.log_softmax(logits, axis=1)


if __name__ == "__main__":
    key = jax.random.PRNGKey(0)
    k_x, k_p = jax.random.split(key)
    params = init_params(k_p)
    packed = prepare_params(params)          # one-time weight packing

    # batch=2 exercises the single-(partial-)tile path; batch=300 exercises a
    # 2-step batch grid (tb=160, cdiv grid, partial last block).
    for batch in (2, 300):
        kx = jax.random.fold_in(k_x, batch)
        x = jax.random.normal(kx, (batch, D_IN), dtype=jnp.float32)

        out = jax.block_until_ready(dynamic_model_forward(x, packed))
        ref = reference_forward(x, params)

        assert out.shape == (batch, N_OUT)
        # Finiteness is asserted only on the real (sliced) log-probs; padded
        # slab lanes are -inf by construction and partial-block rows are never
        # written back.
        assert jnp.all(jnp.isfinite(out)), f"non-finite output at batch={batch}"
        # bf16 fc1 operands (f32 accumulation) -> small, bounded deviation vs f32 ref.
        assert jnp.allclose(out, ref, atol=2e-2, rtol=2e-2), \
            f"mismatch vs JAX reference at batch={batch}"

    print("KERNEL_OK")
</pallas_src>

<mosaic_0001>
module attributes {stable_mosaic.version = 11 : i64} {
  func.func @dynamic_model_kernel(%arg0: i32, %arg1: memref<16x756xf32, #tpu.memory_space<vmem>>, %arg2: memref<756x128xbf16, #tpu.memory_space<vmem>>, %arg3: memref<1x128xf32, #tpu.memory_space<vmem>>, %arg4: memref<128x128xf32, #tpu.memory_space<vmem>>, %arg5: memref<1x128xf32, #tpu.memory_space<vmem>>, %arg6: memref<128x128xf32, #tpu.memory_space<vmem>>, %arg7: memref<1x128xf32, #tpu.memory_space<vmem>>, %arg8: memref<16x128xf32, #tpu.memory_space<vmem>>) attributes {dimension_semantics = [#tpu.dimension_semantics<parallel>], iteration_bounds = array<i64: 1>, scalar_prefetch = 0 : i64, scratch_operands = 0 : i64, tpu.core_type = #tpu.core_type<tc>, window_params = [{transform_indices = @transform_0, window_bounds = array<i64: 16, 756>}, {pipeline_mode = #tpu.pipeline_mode<synchronous>, transform_indices = @transform_1, window_bounds = array<i64: 756, 128>}, {pipeline_mode = #tpu.pipeline_mode<synchronous>, transform_indices = @transform_2, window_bounds = array<i64: 1, 128>}, {pipeline_mode = #tpu.pipeline_mode<synchronous>, transform_indices = @transform_3, window_bounds = array<i64: 128, 128>}, {pipeline_mode = #tpu.pipeline_mode<synchronous>, transform_indices = @transform_4, window_bounds = array<i64: 1, 128>}, {pipeline_mode = #tpu.pipeline_mode<synchronous>, transform_indices = @transform_5, window_bounds = array<i64: 128, 128>}, {pipeline_mode = #tpu.pipeline_mode<synchronous>, transform_indices = @transform_6, window_bounds = array<i64: 1, 128>}, {transform_indices = @transform_7, window_bounds = array<i64: 16, 128>}]} {
    %c0 = arith.constant 0 : index
    %c0_0 = arith.constant 0 : index
    %0 = vector.load %arg1[%c0, %c0_0] : memref<16x756xf32, #tpu.memory_space<vmem>>, vector<16x756xf32>
    %1 = arith.truncf %0 : vector<16x756xf32> to vector<16x756xbf16>
    %c0_1 = arith.constant 0 : index
    %c0_2 = arith.constant 0 : index
    %2 = vector.load %arg2[%c0_1, %c0_2] : memref<756x128xbf16, #tpu.memory_space<vmem>>, vector<756x128xbf16>
    %cst = arith.constant dense<0.000000e+00> : vector<16x128xf32>
    %3 = tpu.matmul %1, %2, %cst {dimension_numbers = #tpu.dot_dimension_numbers<[1], [0], [0], [1], [0, 0, 1, 1], [], []>} : vector<16x756xbf16>, vector<756x128xbf16>, vector<16x128xf32> -> vector<16x128xf32>
    %c0_3 = arith.constant 0 : index
    %c0_4 = arith.constant 0 : index
    %4 = vector.load %arg3[%c0_3, %c0_4] : memref<1x128xf32, #tpu.memory_space<vmem>>, vector<1x128xf32>
    %5 = vector.broadcast %4 : vector<1x128xf32> to vector<16x128xf32>
    %6 = arith.addf %3, %5 : vector<16x128xf32>
    %cst_5 = arith.constant 0.000000e+00 : f32
    %7 = vector.broadcast %cst_5 : f32 to vector<16x128xf32>
    %8 = arith.maximumf %6, %7 : vector<16x128xf32>
    %c0_6 = arith.constant 0 : index
    %c0_7 = arith.constant 0 : index
    %9 = vector.load %arg4[%c0_6, %c0_7] : memref<128x128xf32, #tpu.memory_space<vmem>>, vector<128x128xf32>
    %cst_8 = arith.constant dense<0.000000e+00> : vector<16x128xf32>
    %10 = tpu.matmul %8, %9, %cst_8 {dimension_numbers = #tpu.dot_dimension_numbers<[1], [0], [0], [1], [0, 0, 1, 1], [], []>} : vector<16x128xf32>, vector<128x128xf32>, vector<16x128xf32> -> vector<16x128xf32>
    %c0_9 = arith.constant 0 : index
    %c0_10 = arith.constant 0 : index
    %11 = vector.load %arg5[%c0_9, %c0_10] : memref<1x128xf32, #tpu.memory_space<vmem>>, vector<1x128xf32>
    %12 = vector.broadcast %11 : vector<1x128xf32> to vector<16x128xf32>
    %13 = arith.addf %10, %12 : vector<16x128xf32>
    %cst_11 = arith.constant 0.000000e+00 : f32
    %14 = vector.broadcast %cst_11 : f32 to vector<16x128xf32>
    %15 = arith.maximumf %13, %14 : vector<16x128xf32>
    %c0_12 = arith.constant 0 : index
    %c0_13 = arith.constant 0 : index
    %16 = vector.load %arg6[%c0_12, %c0_13] : memref<128x128xf32, #tpu.memory_space<vmem>>, vector<128x128xf32>
    %cst_14 = arith.constant dense<0.000000e+00> : vector<16x128xf32>
    %17 = tpu.matmul %15, %16, %cst_14 {dimension_numbers = #tpu.dot_dimension_numbers<[1], [0], [0], [1], [0, 0, 1, 1], [], []>} : vector<16x128xf32>, vector<128x128xf32>, vector<16x128xf32> -> vector<16x128xf32>
    %c0_15 = arith.constant 0 : index
    %c0_16 = arith.constant 0 : index
    %18 = vector.load %arg7[%c0_15, %c0_16] : memref<1x128xf32, #tpu.memory_space<vmem>>, vector<1x128xf32>
    %19 = vector.broadcast %18 : vector<1x128xf32> to vector<16x128xf32>
    %20 = arith.addf %17, %19 : vector<16x128xf32>
    %21 = tpu.iota {dimensions = array<i32: 1>} : vector<16x128xi32>
    %c26_i32 = arith.constant 26 : i32
    %22 = vector.broadcast %c26_i32 : i32 to vector<16x128xi32>
    %23 = arith.cmpi slt, %21, %22 : vector<16x128xi32>
    %cst_17 = arith.constant 0xFF800000 : f32
    %24 = vector.broadcast %cst_17 : f32 to vector<16x128xf32>
    %25 = arith.select %23, %20, %24 : vector<16x128xi1>, vector<16x128xf32>
    %cst_18 = arith.constant dense<0xFF800000> : vector<16xf32>
    %26 = vector.multi_reduction <maximumf>, %25, %cst_18 [1] : vector<16x128xf32> to vector<16xf32>
    %27 = vector.shape_cast %26 : vector<16xf32> to vector<16x1xf32>
    %28 = vector.broadcast %27 : vector<16x1xf32> to vector<16x128xf32>
    %29 = arith.subf %25, %28 : vector<16x128xf32>
    %30 = math.exp %29 : vector<16x128xf32>
    %cst_19 = arith.constant dense<0.000000e+00> : vector<16xf32>
    %31 = vector.multi_reduction <add>, %30, %cst_19 [1] : vector<16x128xf32> to vector<16xf32>
    %32 = vector.shape_cast %31 : vector<16xf32> to vector<16x1xf32>
    %33 = math.log %32 : vector<16x1xf32>
    %34 = vector.broadcast %33 : vector<16x1xf32> to vector<16x128xf32>
    %35 = arith.subf %29, %34 : vector<16x128xf32>
    %c0_20 = arith.constant 0 : index
    %c0_21 = arith.constant 0 : index
    %36 = vector.load %arg8[%c0_20, %c0_21] : memref<16x128xf32, #tpu.memory_space<vmem>>, vector<16x128xf32>
    tpu.vector_store %arg8[%c0_20, %c0_21], %35 {strides = array<i32>} : memref<16x128xf32, #tpu.memory_space<vmem>>, vector<16x128xf32>,
    return
  }
  func.func @transform_0(%arg0: i32) -> (i32, i32) {
    %c0_i32 = arith.constant 0 : i32
    %c0_i32_0 = arith.constant 0 : i32
    return %arg0, %c0_i32 : i32, i32
  }
  func.func @transform_1(%arg0: i32) -> (i32, i32) {
    %c0_i32 = arith.constant 0 : i32
    %c0_i32_0 = arith.constant 0 : i32
    %c0_i32_1 = arith.constant 0 : i32
    return %c0_i32, %c0_i32_0 : i32, i32
  }
  func.func @transform_2(%arg0: i32) -> (i32, i32) {
    %c0_i32 = arith.constant 0 : i32
    %c0_i32_0 = arith.constant 0 : i32
    %c0_i32_1 = arith.constant 0 : i32
    return %c0_i32, %c0_i32_0 : i32, i32
  }
  func.func @transform_3(%arg0: i32) -> (i32, i32) {
    %c0_i32 = arith.constant 0 : i32
    %c0_i32_0 = arith.constant 0 : i32
    %c0_i32_1 = arith.constant 0 : i32
    return %c0_i32, %c0_i32_0 : i32, i32
  }
  func.func @transform_4(%arg0: i32) -> (i32, i32) {
    %c0_i32 = arith.constant 0 : i32
    %c0_i32_0 = arith.constant 0 : i32
    %c0_i32_1 = arith.constant 0 : i32
    return %c0_i32, %c0_i32_0 : i32, i32
  }
  func.func @transform_5(%arg0: i32) -> (i32, i32) {
    %c0_i32 = arith.constant 0 : i32
    %c0_i32_0 = arith.constant 0 : i32
    %c0_i32_1 = arith.constant 0 : i32
    return %c0_i32, %c0_i32_0 : i32, i32
  }
  func.func @transform_6(%arg0: i32) -> (i32, i32) {
    %c0_i32 = arith.constant 0 : i32
    %c0_i32_0 = arith.constant 0 : i32
    %c0_i32_1 = arith.constant 0 : i32
    return %c0_i32, %c0_i32_0 : i32, i32
  }
  func.func @transform_7(%arg0: i32) -> (i32, i32) {
    %c0_i32 = arith.constant 0 : i32
    %c0_i32_0 = arith.constant 0 : i32
    return %arg0, %c0_i32 : i32, i32
  }
}

</mosaic_0001>

<bundles_post_ra>
// kernel: tpu_custom_call.1
= control target key start
LH: loop header
LB: loop body
LE: loop exit
PB: predicated region body
PF: predicated region fallthrough
CT: control target
= control target key end

     0   :  { %12 = vsyncpa [#allocation3], 0  ;;  %s1637_s0 = inlined_call_operand.hbm [shape: f32[2,756], index: 0, kind: input, shape index: {}]   ;;  %s1638_s1 = inlined_call_operand.hbm [shape: bf16[756,128], index: 1, kind: input, shape index: {}]   ;;  %s1639_s2 = inlined_call_operand.vmem [shape: f32[1,128], index: 2, kind: input, shape index: {}]   ;;  %s1640_s3 = inlined_call_operand.hbm [shape: f32[128,128], index: 3, kind: input, shape index: {}]   ;;  %s1641_s4 = inlined_call_operand.vmem [shape: f32[1,128], index: 4, kind: input, shape index: {}]   ;;  %s1642_s5 = inlined_call_operand.hbm [shape: f32[128,128], index: 5, kind: input, shape index: {}]   ;;  %s1643_s6 = inlined_call_operand.vmem [shape: f32[1,128], index: 6, kind: input, shape index: {}]   ;;  %s1644_s7 = inlined_call_operand.hbm [shape: f32[2,128], index: 7, kind: output, shape index: {}]  }
   0x1   :  { %13 = vsyncpa [#allocation6], 0 }
   0x2   :  { %14 = vsyncpa [#allocation9], 0 }
   0x3   :  { %15 = vsyncpa [#allocation4], 0 }
   0x4   :  { %20 = vsyncadd [#allocation3], 1344  ;;  %s1498_s24 = smov [#allocation5]   ;;  %s1380_s28 = scalar_lea.hbm %s1638_s1, 6080 }
   0x5   :  { %s33_s25 = sshll.u32 %s1498_s24, 4  ;;  %p1381_p0 = scmp.ne.s32.totalorder %s1638_s1, %s1380_s28  ;;  %s34_s25 = int_to_ptr.vmem [resolvable:$true] %s33_s25 }
   0x6   :  { %p1384_p1 = scmp.lt.u32.totalorder %s1380_s28, %s1638_s1 }
   0x8   :  { %p1386_p2 = pnand %p1384_p1, %p1381_p0 }
   0xa   :  { %1389 = shalt.err (!%p1386_p2)
}
   0xb   :  { %s1390_s10 = scalar_lea.vmem %s34_s25, 6080  ;;  %p1395_p4 = scmp.lt.s32.totalorder %s34_s25, %s34_s25 }
   0xc   :  { %p1391_p3 = scmp.ne.s32.totalorder %s34_s25, %s1390_s10  ;;  %p1396_p5 = scmp.lt.s32.totalorder %s1390_s10, %s1390_s10 }
   0xe   :  { %p1397_p6 = por %p1396_p5, %p1395_p4 }
  0x10   :  { %p1398_p7 = pnand %p1397_p6, %p1391_p3 }
  0x12   :  { %1401 = shalt.err (!%p1398_p7)
}
  0x13   :  { %s1499_s11 = smov 64   ;;  %s1500_s12 = smov 4  }
  0x14   :  { %39 = dma.hbm_to_vmem [thread:$0]  %s1638_s1, 6080, %s34_s25, [#allocation6], %s1499_s11, %s1499_s11, %s1500_s12  }
  0x15   :  { %s1501_s15 = smov [#allocation2]   ;;  %s1402_s19 = scalar_lea.hbm %s1637_s0, 192 }
  0x16   :  { %s21_s16 = sshll.u32 %s1501_s15, 4  ;;  %p1403_p8 = scmp.ne.s32.totalorder %s1637_s0, %s1402_s19  ;;  %s22_s16 = int_to_ptr.vmem [resolvable:$true] %s21_s16 }
  0x17   :  { %p1406_p9 = scmp.lt.u32.totalorder %s1402_s19, %s1637_s0 }
  0x19   :  { %p1408_p10 = pnand %p1406_p9, %p1403_p8 }
  0x1b   :  { %1411 = shalt.err (!%p1408_p10)
}
  0x1c   :  { %s1412_s24 = scalar_lea.vmem %s22_s16, 192  ;;  %s1416_s1 = scalar_lea.vmem %s22_s16, 1536 }
  0x1d   :  { %p1413_p11 = scmp.ne.s32.totalorder %s22_s16, %s1412_s24  ;;  %p1417_p12 = scmp.lt.s32.totalorder %s22_s16, %s22_s16 }
  0x1e   :  { %p1418_p13 = scmp.lt.s32.totalorder %s1416_s1, %s1412_s24 }
  0x20   :  { %p1419_p0 = por %p1418_p13, %p1417_p12 }
  0x22   :  { %p1420_p1 = pnand %p1419_p0, %p1413_p11 }
  0x24   :  { %1423 = shalt.err (!%p1420_p1)
}
  0x25   :  { %s1502_s25 = smov 192   ;;  %s1503_s26 = smov 12  }
  0x26   :  { %27 = dma.hbm_to_vmem [thread:$0]  %s1637_s0, 192, %s22_s16, [#allocation3], %s1502_s25, %s1502_s25, %s1503_s26  }
  0x27   :  { %s1504_s29 = smov [#allocation7]   ;;  %s1424_s10 = scalar_lea.hbm %s1640_s3, 2048 }
  0x28   :  { %s47_s30 = sshll.u32 %s1504_s29, 4  ;;  %p1425_p2 = scmp.ne.s32.totalorder %s1640_s3, %s1424_s10  ;;  %s48_s30 = int_to_ptr.vmem [resolvable:$true] %s47_s30 }
  0x29   :  { %p1428_p3 = scmp.lt.u32.totalorder %s1424_s10, %s1640_s3 }
  0x2b   :  { %p1430_p4 = pnand %p1428_p3, %p1425_p2 }
  0x2d   :  { %1433 = shalt.err (!%p1430_p4)
}
  0x2e   :  { %s1434_s15 = scalar_lea.vmem %s48_s30, 2048  ;;  %p1439_p6 = scmp.lt.s32.totalorder %s48_s30, %s48_s30 }
  0x2f   :  { %p1435_p5 = scmp.ne.s32.totalorder %s48_s30, %s1434_s15  ;;  %p1440_p7 = scmp.lt.s32.totalorder %s1434_s15, %s1434_s15 }
  0x31   :  { %p1441_p8 = por %p1440_p7, %p1439_p6 }
  0x33   :  { %p1442_p9 = pnand %p1441_p8, %p1435_p5 }
  0x35   :  { %1445 = shalt.err (!%p1442_p9)
}
  0x36   :  { %s1505_s0 = smov 128   ;;  %s1506_s16 = smov 8  }
  0x37   :  { %53 = dma.hbm_to_vmem [thread:$0]  %s1640_s3, 2048, %s48_s30, [#allocation6], %s1505_s0, %s1505_s0, %s1506_s16  }
  0x38   :  { %s1507_s19 = smov [#allocation8]   ;;  %s1446_s23 = scalar_lea.hbm %s1642_s5, 2048 }
  0x39   :  { %s61_s20 = sshll.u32 %s1507_s19, 4  ;;  %p1447_p10 = scmp.ne.s32.totalorder %s1642_s5, %s1446_s23  ;;  %s62_s20 = int_to_ptr.vmem [resolvable:$true] %s61_s20 }
  0x3a   :  { %p1450_p11 = scmp.lt.u32.totalorder %s1446_s23, %s1642_s5 }
  0x3c   :  { %p1452_p12 = pnand %p1450_p11, %p1447_p10 }
  0x3e   :  { %1455 = shalt.err (!%p1452_p12)
}
  0x3f   :  { %s1456_s27 = scalar_lea.vmem %s62_s20, 2048  ;;  %p1461_p0 = scmp.lt.s32.totalorder %s62_s20, %s62_s20 }
  0x40   :  { %p1457_p13 = scmp.ne.s32.totalorder %s62_s20, %s1456_s27  ;;  %p1462_p1 = scmp.lt.s32.totalorder %s1456_s27, %s1456_s27 }
  0x42   :  { %p1463_p2 = por %p1462_p1, %p1461_p0 }
  0x44   :  { %p1464_p3 = pnand %p1463_p2, %p1457_p13 }
  0x46   :  { %1467 = shalt.err (!%p1464_p3)
}
  0x47   :  { %67 = dma.hbm_to_vmem [thread:$0]  %s1642_s5, 2048, %s62_s20, [#allocation9], %s1505_s0, %s1505_s0, %s1506_s16  }
  0x48   :  { %1490 = dma.done.wait [#allocation3], 1536  }
  0x49   :  { %1491 = vsyncadd [#allocation3], 4294965760 }
  0x4a   :  { %1492 = dma.done.wait [#allocation6], 8128  }
  0x4b   :  { %1493 = vsyncadd [#allocation6], 4294959168 }
  0x4c   :  { %1494 = dma.done.wait [#allocation9], 2048  }
  0x4d   :  { %1495 = vsyncadd [#allocation9], 4294965248  ;;  %v1308_v0 = vld [vmem:[#allocation5 + $0x40] sm:$0xff]   ;;  %v1312_v4 = vld [vmem:[#allocation5 + $0x48] sm:$0xff]   ;;  %v1508_v24 = vmov 1983009808   ;;  %v122_v26 = vlaneseq }
  0x4e   :  { %v1309_v1 = vld [vmem:[#allocation5] sm:$0xff]   ;;  %1057 = vmatprep.subr.bf16.mxu0 %v1308_v0  ;;  %v1313_v5 = vld [vmem:[#allocation5 + $0x8] sm:$0xff]   ;;  %v1316_v8 = vld [vmem:[#allocation5 + $0x50] sm:$0xff]   ;;  %v120_v25 = vunpack.c.l.s4 %v1508_v24  ;;  %vm628_vm0 = vcmask 949248   ;;  %vm632_vm1 = vcmask 1041408  }
  0x4f   :  { %v1310_v2 = vld [vmem:[#allocation5 + $0xc0] sm:$0xff]   ;;  %1058 = vmatpush3.bf16.msra.mxu0 %v1309_v1  ;;  %v1314_v6 = vld [vmem:[#allocation5 + $0xc8] sm:$0xff]   ;;  %v1317_v9 = vld [vmem:[#allocation5 + $0x10] sm:$0xff]   ;;  %v123_v32 = vshrl.u32 %v122_v26, 7 }
  0x50   :  { %v1311_v3 = vld [vmem:[#allocation5 + $0x80] sm:$0xff]   ;;  %1079 = vmatprep.subr.bf16.mxu1 %v1310_v2  ;;  %1059 = vmatprep.subr.bf16.mxu0 %v1312_v4  ;;  %v1315_v7 = vld [vmem:[#allocation5 + $0x88] sm:$0xff]   ;;  %v1318_v10 = vld [vmem:[#allocation5 + $0xd0] sm:$0xff]   ;;  %v121_v31 = vunpack.c.0.s8 %v120_v25 }
  0x51   :  { %1080 = vmatpush3.bf16.msra.mxu1 %v1311_v3  ;;  %v1319_v11 = vld [vmem:[#allocation5 + $0x90] sm:$0xff]   ;;  %v1320_v12 = vld [vmem:[#allocation5 + $0x58] sm:$0xff]   ;;  %v1324_v16 = vld [vmem:[#allocation5 + $0x60] sm:$0xff]  }
  0x52   :  { %1081 = vmatprep.subr.bf16.mxu1 %v1314_v6  ;;  %v1321_v13 = vld [vmem:[#allocation5 + $0x18] sm:$0xff]   ;;  %v1325_v17 = vld [vmem:[#allocation5 + $0x20] sm:$0xff]   ;;  %v1328_v20 = vld [vmem:[#allocation5 + $0x68] sm:$0xff]   ;;  %v1601_v36 = vsub.s32 %v121_v31, %v123_v32 }
  0x53   :  { %1060 = vmatpush3.bf16.msra.mxu0 %v1313_v5  ;;  %v1322_v14 = vld [vmem:[#allocation5 + $0xd8] sm:$0xff]   ;;  %v1326_v18 = vld [vmem:[#allocation5 + $0xe0] sm:$0xff]   ;;  %v1329_v21 = vld [vmem:[#allocation5 + $0x28] sm:$0xff]  }
  0x54   :  { %1061 = vmatprep.subr.bf16.mxu0 %v1316_v8  ;;  %v1323_v15 = vld [vmem:[#allocation5 + $0x98] sm:$0xff]   ;;  %v1327_v19 = vld [vmem:[#allocation5 + $0xa0] sm:$0xff]   ;;  %v1330_v22 = vld [vmem:[#allocation5 + $0xe8] sm:$0xff]  }
  0x55   :  { %1082 = vmatpush3.bf16.msra.mxu1 %v1315_v7  ;;  %v1331_v23 = vld [vmem:[#allocation5 + $0xa8] sm:$0xff]   ;;  %v1332_v27 = vld [vmem:[#allocation5 + $0x70] sm:$0xff]   ;;  %v1336_v33 = vld [vmem:[#allocation5 + $0x78] sm:$0xff]  }
  0x56   :  { %1083 = vmatprep.subr.bf16.mxu1 %v1318_v10  ;;  %v1333_v28 = vld [vmem:[#allocation5 + $0x30] sm:$0xff]   ;;  %v1337_v34 = vld [vmem:[#allocation5 + $0x38] sm:$0xff]   ;;  %v1339_v37 = vld [vmem:[#allocation2] ss:$12 sps:$4 sm:$0xff]  }
  0x57   :  { %1062 = vmatpush3.bf16.msra.mxu0 %v1317_v9  ;;  %v1334_v29 = vld [vmem:[#allocation5 + $0xf0] sm:$0xff]   ;;  %v1338_v35 = vld [vmem:[#allocation5 + $0xf8] sm:$0xff]   ;;  %v125_v41 = vrot.slane %v1339_v37, %v1601_v36  ;;  %v1348_v46 = vld [vmem:[#allocation5 + $0x140] sm:$0xff]  }
  0x58   :  { %1063 = vmatprep.subr.bf16.mxu0 %v1320_v12  ;;  %v1335_v30 = vld [vmem:[#allocation5 + $0xb0] sm:$0xff]   ;;  %v1341_v38 = vld [vmem:[#allocation2 + $0x18] ss:$12 sps:$4 sm:$0xff]   ;;  %v1350_v48 = vld [vmem:[#allocation2 + $0x1c] ss:$12 sps:$4 sm:$0xff]  }
  0x59   :  { %1084 = vmatpush3.bf16.msra.mxu1 %v1319_v11  ;;  %v1343_v39 = vld [vmem:[#allocation2 + $0x30] ss:$12 sps:$4 sm:$0xff]   ;;  %v1345_v40 = vld [vmem:[#allocation2 + $0x48] ss:$12 sps:$4 sm:$0xff]   ;;  %v139_v43 = vrot.slane %v1341_v38, %v1601_v36  ;;  %v1352_v54 = vld [vmem:[#allocation2 + $0x4c] ss:$12 sps:$4 sm:$0xff]   ;;  %v146_v56 = vrot.slane %v1350_v48, %v1601_v36 }
  0x5a   :  { %1085 = vmatprep.subr.bf16.mxu1 %v1322_v14  ;;  %v1347_v42 = vld [vmem:[#allocation5 + $0xb8] sm:$0xff]   ;;  %v179_v44 = vrot.slane %v1343_v39, %v1601_v36  ;;  %v193_v45 = vrot.slane %v1345_v40, %v1601_v36  ;;  %v1349_v47 = vld [vmem:[#allocation2 + $0x4] ss:$12 sps:$4 sm:$0xff]   ;;  %v1351_v49 = vld [vmem:[#allocation2 + $0x34] ss:$12 sps:$4 sm:$0xff]   ;;  %v200_v60 = vrot.slane %v1352_v54, %v1601_v36 }
  0x5b   :  { %1064 = vmatpush3.bf16.msra.mxu0 %v1321_v13  ;;  %v148_v50 = vcombine.high %v125_v41, %v139_v43  ;;  %v147_v52 = vcombine.low %v125_v41, %v139_v43  ;;  %v132_v55 = vrot.slane %v1349_v47, %v1601_v36  ;;  %v186_v57 = vrot.slane %v1351_v49, %v1601_v36  ;;  %v1353_v61 = vld [vmem:[#allocation5 + $0x100] sm:$0xff]   ;;  %v1354_v0 = vld [vmem:[#allocation5 + $0x148] sm:$0xff]   ;;  %v1356_v6 = vld [vmem:[#allocation5 + $0x150] sm:$0xff]  }
  0x5c   :  { %1065 = vmatprep.subr.bf16.mxu0 %v1324_v16  ;;  %v202_v51 = vcombine.high %v179_v44, %v193_v45  ;;  %v201_v53 = vcombine.low %v179_v44, %v193_v45  ;;  %v1355_v5 = vld [vmem:[#allocation5 + $0x108] sm:$0xff]   ;;  %v1357_v7 = vld [vmem:[#allocation5 + $0x110] sm:$0xff]   ;;  %v1358_v8 = vld [vmem:[#allocation5 + $0x158] sm:$0xff]  }
  0x5d   :  { %1086 = vmatpush3.bf16.msra.mxu1 %v1323_v15  ;;  %v150_v62 = vcombine.high %v132_v55, %v146_v56  ;;  %v149_v63 = vcombine.low %v132_v55, %v146_v56  ;;  %v204_v1 = vcombine.high %v186_v57, %v200_v60  ;;  %v203_v2 = vcombine.low %v186_v57, %v200_v60  ;;  %v1359_v9 = vld [vmem:[#allocation5 + $0x118] sm:$0xff]   ;;  %v1360_v10 = vld [vmem:[#allocation5 + $0x160] sm:$0xff]   ;;  %v1368_v12 = vld [vmem:[#allocation2 + $0x8] ss:$12 sps:$4 sm:$0xff]  }
  0x5e   :  { %1087 = vmatprep.subr.bf16.mxu1 %v1326_v18  ;;  %v236_v58 = vpack.c.bf16 %v202_v51, %v148_v50  ;;  %v235_v59 = vpack.c.bf16 %v201_v53, %v147_v52  ;;  %v1361_v11 = vld [vmem:[#allocation5 + $0x120] sm:$0xff]   ;;  %v1371_v15 = vld [vmem:[#allocation2 + $0x50] ss:$12 sps:$4 sm:$0xff]   ;;  %v1362_v16 = vld [vmem:[#allocation5 + $0x168] sm:$0xff]  }
  0x5f   :  { %1066 = vmatpush3.bf16.msra.mxu0 %v1325_v17  ;;  %v238_v3 = vpack.c.bf16 %v204_v1, %v150_v62  ;;  %v237_v4 = vpack.c.bf16 %v203_v2, %v149_v63  ;;  %v1369_v13 = vld [vmem:[#allocation2 + $0x20] ss:$12 sps:$4 sm:$0xff]   ;;  %v1370_v14 = vld [vmem:[#allocation2 + $0x38] ss:$12 sps:$4 sm:$0xff]   ;;  %v159_v17 = vrot.slane %v1368_v12, %v1601_v36  ;;  %v1364_v24 = vld [vmem:[#allocation5 + $0x170] sm:$0xff]  }
  0x60   :  { %1067 = vmatprep.subr.bf16.mxu0 %v1328_v20  ;;  %668 = vmatprep.mubr.bf16.mxu0 %v236_v58  ;;  %v166_v18 = vrot.slane %v1369_v13, %v1601_v36  ;;  %v220_v20 = vrot.slane %v1371_v15, %v1601_v36  ;;  %v1367_v31 = vld [vmem:[#allocation5 + $0x138] sm:$0xff]   ;;  %v766_v40 = vld [vmem:[#allocation7 + $0x28] sm:$0xff]  ;;  %v771_v48 = vld [vmem:[#allocation7 + $0x50] sm:$0xff] }
  0x61   :  { %1088 = vmatpush3.bf16.msra.mxu1 %v1327_v19  ;;  %709 = vmatprep.mubr.bf16.mxu1 %v238_v3  ;;  %v213_v19 = vrot.slane %v1370_v14, %v1601_v36  ;;  %v763_v36 = vld [vmem:[#allocation7 + $0x10] sm:$0xff]  ;;  %v764_v37 = vld [vmem:[#allocation7 + $0x18] sm:$0xff]  ;;  %v765_v39 = vld [vmem:[#allocation7 + $0x20] sm:$0xff] }
  0x62   :  { %1089 = vmatprep.subr.bf16.mxu1 %v1330_v22  ;;  %v168_v22 = vcombine.high %v159_v17, %v166_v18  ;;  %v1233_v38 = vpack.c.bf16 %v764_v37, %v763_v36  ;;  %v1237_v41 = vpack.c.bf16 %v766_v40, %v765_v39  ;;  %v768_v43 = vld [vmem:[#allocation7 + $0x38] sm:$0xff]  ;;  %v769_v45 = vld [vmem:[#allocation7 + $0x40] sm:$0xff]  ;;  %v774_v52 = vld [vmem:[#allocation7 + $0x68] sm:$0xff] }
  0x63   :  { %1068 = vmatpush3.bf16.msra.mxu0 %v1329_v21  ;;  %v1363_v21 = vld [vmem:[#allocation5 + $0x128] sm:$0xff]   ;;  %v772_v49 = vld [vmem:[#allocation7 + $0x58] sm:$0xff]  ;;  %v773_v51 = vld [vmem:[#allocation7 + $0x60] sm:$0xff] }
  0x64   :  { %1069 = vmatprep.subr.bf16.mxu0 %v1332_v27  ;;  %v1365_v27 = vld [vmem:[#allocation5 + $0x130] sm:$0xff]   ;;  %v1249_v50 = vpack.c.bf16 %v772_v49, %v771_v48  ;;  %v1253_v53 = vpack.c.bf16 %v774_v52, %v773_v51  ;;  %v861_v57 = vld [vmem:[#allocation8] sm:$0xff]  ;;  %v862_v58 = vld [vmem:[#allocation8 + $0x8] sm:$0xff]  ;;  %v960_v52 = vand.u32 127, %v122_v26 }
  0x65   :  { %1090 = vmatpush3.bf16.msra.mxu1 %v1331_v23  ;;  %v222_v23 = vcombine.high %v213_v19, %v220_v20  ;;  %v775_v54 = vld [vmem:[#allocation7 + $0x70] sm:$0xff]  ;;  %v776_v55 = vld [vmem:[#allocation7 + $0x78] sm:$0xff]  ;;  %v1261_v60 = vpack.c.bf16 %v862_v58, %v861_v57  ;;  %v865_v63 = vld [vmem:[#allocation8 + $0x20] sm:$0xff] }
  0x66   :  { %1091 = vmatprep.subr.bf16.mxu1 %v1334_v29  ;;  %v167_v29 = vcombine.low %v159_v17, %v166_v18  ;;  %v1257_v56 = vpack.c.bf16 %v776_v55, %v775_v54  ;;  %v867_v2 = vld [vmem:[#allocation8 + $0x30] sm:$0xff]  ;;  %v868_v3 = vld [vmem:[#allocation8 + $0x38] sm:$0xff]  ;;  %v874_v12 = vld [vmem:[#allocation8 + $0x68] sm:$0xff]  ;;  %vm961_vm2 = vcmp.lt.s32.totalorder %v960_v52, 26 }
  0x67   :  { %1070 = vmatpush3.bf16.msra.mxu0 %v1333_v28  ;;  %v240_v25 = vpack.c.bf16 %v222_v23, %v168_v22  ;;  %v1366_v28 = vld [vmem:[#allocation5 + $0x178] ss:$0 sps:$4 sm:$0x33]   ;;  %v1005_v15 = vld [vmem:[%s1639_s2] ss:$0 sm:$0xff] }
  0x68   :  { %1071 = vmatprep.subr.bf16.mxu0 %v1336_v33  ;;  %v761_v33 = vld [vmem:[#allocation7] sm:$0xff] }
  0x69   :  { %1092 = vmatpush3.bf16.msra.mxu1 %v1335_v30  ;;  %v221_v30 = vcombine.low %v213_v19, %v220_v20 }
  0x6a   :  { %1093 = vmatprep.subr.bf16.mxu1 %v1338_v35 }
  0x6b   :  { %1072 = vmatpush3.bf16.msra.mxu0 %v1337_v34  ;;  %v239_v32 = vpack.c.bf16 %v221_v30, %v167_v29  ;;  %v762_v34 = vld [vmem:[#allocation7 + $0x8] sm:$0xff] }
  0x6c   :  { %1101 = vmatprep.subr.bf16.mxu0 %v1348_v46  ;;  %v1229_v35 = vpack.c.bf16 %v762_v34, %v761_v33  ;;  %v770_v46 = vld [vmem:[#allocation7 + $0x48] sm:$0xff] }
  0x6d   :  { %1094 = vmatpush3.bf16.msra.mxu1 %v1347_v42  ;;  %v767_v42 = vld [vmem:[#allocation7 + $0x30] sm:$0xff]  ;;  %v1245_v47 = vpack.c.bf16 %v770_v46, %v769_v45  ;;  %v1055_v45 = vld [vmem:[%s1641_s4] ss:$0 sm:$0xff] }
  0x6e   :  { %669 = vmatmul.mubr.bf16.vlgmr.msra.gmra.mrb[0].mxu0 %v235_v59  ;;  %1230 = vmatprep.subr.bf16.mxu1 %v1229_v35  ;;  %v1241_v44 = vpack.c.bf16 %v768_v43, %v767_v42  ;;  %v863_v59 = vld [vmem:[#allocation8 + $0x10] sm:$0xff]  ;;  %v876_v43 = vld [vmem:[#allocation8 + $0x78] sm:$0xff] }
  0x6f   :  { %1102 = vmatpush3.bf16.msra.mxu0 %v1353_v61  ;;  %1054 = vmatprep.mubr.msk.bf16.mxu0 %vm628_vm0, %v240_v25  ;;  %v864_v61 = vld [vmem:[#allocation8 + $0x18] sm:$0xff]  ;;  %v875_v42 = vld [vmem:[#allocation8 + $0x70] sm:$0xff] }
  0x70   :  { %1103 = vmatprep.subr.bf16.mxu0 %v1354_v0  ;;  %710 = vmatmul.mubr.bf16.vlgmr.msra.gmra.mrb[0].mxu1 %v237_v4  ;;  %v1265_v62 = vpack.c.bf16 %v864_v61, %v863_v59  ;;  %v866_v0 = vld [vmem:[#allocation8 + $0x28] sm:$0xff]  ;;  %v1273_v4 = vpack.c.bf16 %v868_v3, %v867_v2 }
  0x71   :  { %1232 = vmatpush3.bf16.msra.mxu1 %v1229_v35  ;;  %v1269_v1 = vpack.c.bf16 %v866_v0, %v865_v63 }
  0x72   :  { %1234 = vmatprep.subr.bf16.mxu1 %v1233_v38 }
  0x73   :  { %1104 = vmatpush3.bf16.msra.mxu0 %v1355_v5  ;;  %v869_v5 = vld [vmem:[#allocation8 + $0x40] sm:$0xff] }
  0x74   :  { %1105 = vmatprep.subr.bf16.mxu0 %v1356_v6  ;;  %v870_v6 = vld [vmem:[#allocation8 + $0x48] sm:$0xff] }
  0x75   :  { %1236 = vmatpush3.bf16.msra.mxu1 %v1233_v38 }
  0x76   :  { %1238 = vmatprep.subr.bf16.mxu1 %v1237_v41 }
  0x77   :  { %1106 = vmatpush3.bf16.msra.mxu0 %v1357_v7  ;;  %v1277_v7 = vpack.c.bf16 %v870_v6, %v869_v5 }
  0x78   :  { %1107 = vmatprep.subr.bf16.mxu0 %v1358_v8  ;;  %v871_v8 = vld [vmem:[#allocation8 + $0x50] sm:$0xff] }
  0x79   :  { %1240 = vmatpush3.bf16.msra.mxu1 %v1237_v41 }
  0x7a   :  { %1242 = vmatprep.subr.bf16.mxu1 %v1241_v44 }
  0x7b   :  { %1108 = vmatpush3.bf16.msra.mxu0 %v1359_v9  ;;  %v872_v9 = vld [vmem:[#allocation8 + $0x58] sm:$0xff] }
  0x7c   :  { %1109 = vmatprep.subr.bf16.mxu0 %v1360_v10  ;;  %v1281_v10 = vpack.c.bf16 %v872_v9, %v871_v8 }
  0x7d   :  { %1244 = vmatpush3.bf16.msra.mxu1 %v1241_v44  ;;  %v1289_v44 = vpack.c.bf16 %v876_v43, %v875_v42 }
  0x7e   :  { %1246 = vmatprep.subr.bf16.mxu1 %v1245_v47 }
  0x7f   :  { %1110 = vmatpush3.bf16.msra.mxu0 %v1361_v11  ;;  %v873_v11 = vld [vmem:[#allocation8 + $0x60] sm:$0xff] }
  0x80   :  { %1111 = vmatprep.subr.bf16.mxu0 %v1362_v16  ;;  %v1285_v13 = vpack.c.bf16 %v874_v12, %v873_v11 }
  0x81   :  { %1248 = vmatpush3.bf16.msra.mxu1 %v1245_v47 }
  0x82   :  { %1250 = vmatprep.subr.bf16.mxu1 %v1249_v50 }
  0x83   :  { %1112 = vmatpush3.bf16.msra.mxu0 %v1363_v21 }
  0x84   :  { %1113 = vmatprep.subr.bf16.mxu0 %v1364_v24 }
  0x85   :  { %1252 = vmatpush3.bf16.msra.mxu1 %v1249_v50 }
  0x86   :  { %1254 = vmatprep.subr.bf16.mxu1 %v1253_v53 }
  0x87   :  { %1114 = vmatpush3.bf16.msra.mxu0 %v1365_v27 }
  0x88   :  { %1293 = vmatprep.subr.msk.bf16.mxu0 %vm632_vm1, %v1366_v28 }
  0x89   :  { %1256 = vmatpush3.bf16.msra.mxu1 %v1253_v53  ;;  %v1056_v53 = vld [vmem:[%s1643_s6] ss:$0 sm:$0xff] }
  0x8a   :  { %1258 = vmatprep.subr.bf16.mxu1 %v1257_v56 }
  0x8b   :  { %1116 = vmatpush3.bf16.msra.mxu0 %v1367_v31 }
  0x8c   :  { %1262 = vmatprep.subr.bf16.mxu0 %v1261_v60 }
  0x8d   :  { %1260 = vmatpush3.bf16.msra.mxu1 %v1257_v56 }
  0x8e   :  { %751 = vmatmul.mubr.bf16.vlgmr.msra.gmra.mrb[4].mxu0 %v239_v32 }
  0x8f   :  { %1264 = vmatpush3.bf16.msra.mxu0 %v1261_v60 }
  0x90   :  { %1266 = vmatprep.subr.bf16.mxu0 %v1265_v62 }
  0x93   :  { %1268 = vmatpush3.bf16.msra.mxu0 %v1265_v62 }
  0x94   :  { %1270 = vmatprep.subr.bf16.mxu0 %v1269_v1 }
  0x97   :  { %1272 = vmatpush3.bf16.msra.mxu0 %v1269_v1 }
  0x98   :  { %1274 = vmatprep.subr.bf16.mxu0 %v1273_v4 }
  0x9b   :  { %1276 = vmatpush3.bf16.msra.mxu0 %v1273_v4 }
  0x9c   :  { %1278 = vmatprep.subr.bf16.mxu0 %v1277_v7 }
  0x9f   :  { %1280 = vmatpush3.bf16.msra.mxu0 %v1277_v7 }
  0xa0   :  { %1282 = vmatprep.subr.bf16.mxu0 %v1281_v10 }
  0xa3   :  { %1284 = vmatpush3.bf16.msra.mxu0 %v1281_v10 }
  0xa4   :  { %1286 = vmatprep.subr.bf16.mxu0 %v1285_v13 }
  0xa7   :  { %1288 = vmatpush3.bf16.msra.mxu0 %v1285_v13 }
  0xa8   :  { %1290 = vmatprep.subr.bf16.mxu0 %v1289_v44 }
  0xab   :  { %1292 = vmatpush3.bf16.msra.mxu0 %v1289_v44 }
 0x141   :  { %v1073_v14 = vpop.f32.mrb[0].mxu0 }
 0x142   :  { %v1074_v16 = vpop.f32.mrb[1].mxu0 }
 0x143   :  { %v1075_v17 = vadd.f32 %v1074_v16, %v1073_v14  ;;  %v1076_v18 = vpop.f32.mrb[2].mxu0  ;;  %v1095_v21 = vpop.f32.mrb[0].mxu1 }
 0x144   :  { %v1077_v19 = vpop.f32.mrb[3].mxu0  ;;  %v1096_v23 = vpop.f32.mrb[1].mxu1 }
 0x145   :  { %v671_v20 = vadd.f32 %v1075_v17, %v1005_v15  ;;  %v1078_v22 = vadd.f32 %v1077_v19, %v1076_v18  ;;  %v1097_v25 = vadd.f32 %v1096_v23, %v1095_v21  ;;  %v1098_v27 = vpop.f32.mrb[2].mxu1 }
 0x146   :  { %v1099_v28 = vpop.f32.mrb[3].mxu1 }
 0x147   :  { %v674_v24 = vadd.f32 %v1078_v22, %v1005_v15  ;;  %v712_v29 = vadd.f32 %v1097_v25, %v671_v20  ;;  %v1100_v30 = vadd.f32 %v1099_v28, %v1098_v27 }
 0x149   :  { %v715_v31 = vadd.f32 %v1100_v30, %v674_v24 }
 0x161   :  { %v1117_v32 = vpop.f32.mrb[4].mxu0 }
 0x162   :  { %v1118_v33 = vpop.f32.mrb[5].mxu0 }
 0x163   :  { %v1119_v34 = vadd.f32 %v1118_v33, %v1117_v32  ;;  %v1120_v35 = vpop.f32.mrb[6].mxu0 }
 0x164   :  { %v1121_v36 = vpop.f32.mrb[7].mxu0 }
 0x165   :  { %v753_v37 = vadd.f32 %v1119_v34, %v712_v29  ;;  %v1122_v38 = vadd.f32 %v1121_v36, %v1120_v35 }
 0x167   :  { %v759_v39 = vmax.f32 %v753_v37, 0.0  ;;  %v756_v40 = vadd.f32 %v1122_v38, %v715_v31 }
 0x169   :  { %v760_v41 = vmax.f32 %v756_v40, 0.0  ;;  %1191 = vmatprep.mubr.f32.mxu1 %v759_v39 }
 0x16b   :  { %1192 = vmatmul.mubr.f32.vlgmr.msra.gmra.mrb[4].mxu1 %v760_v41 }
 0x23e   :  { %v1193_v46 = vpop.f32.mrb[4].mxu1 }
 0x23f   :  { %v856_v47 = vadd.f32 %v1193_v46, %v1055_v45  ;;  %v850_v48 = vpop.f32.mrb[5].mxu1 }
 0x240   :  { %v851_v49 = vadd.f32 %v1055_v45, %v850_v48 }
 0x241   :  { %v860_v51 = vmax.f32 %v856_v47, 0.0 }
 0x242   :  { %v859_v50 = vmax.f32 %v851_v49, 0.0 }
 0x244   :  { %1226 = vmatprep.mubr.f32.mxu0 %v859_v50 }
 0x245   :  { %1227 = vmatmul.mubr.f32.vlgmr.msra.gmra.mrb[8].mxu0 %v860_v51 }
 0x318   :  { %v1228_v54 = vpop.f32.mrb[8].mxu0 }
 0x319   :  { %v950_v55 = vpop.f32.mrb[9].mxu0  ;;  %v956_v57 = vadd.f32 %v1228_v54, %v1056_v53 }
 0x31a   :  { %v951_v56 = vadd.f32 %v1056_v53, %v950_v55 }
 0x31b   :  { %v963_v59 = vsel %vm961_vm2, %v956_v57, -inf }
 0x31c   :  { %v962_v58 = vsel %vm961_vm2, %v951_v56, -inf }
 0x31d   :  { %964 = vmax.xlane.f32.xlu0 %v962_v58 }
 0x321   :  { %966 = vmax.xlane.f32.xlu0 %v963_v59 }
 0x3aa   :  { %v965_v60 = vpop.xlane.xlu0 %964 }
 0x3ab   :  { %v968_v61 = vsub.f32 %v962_v58, %v965_v60 }
 0x3ad   :  { %v970_v62 = vmul.f32 1.442695, %v968_v61 }
 0x3ae   :  { %v967_v63 = vpop.xlane.xlu0 %966 }
 0x3af   :  { %v969_v0 = vsub.f32 %v963_v59, %v967_v63  ;;  %1372 = vpow2.f32 %v970_v62 }
 0x3b1   :  { %v972_v26 = vmul.f32 1.442695, %v969_v0 }
 0x3b3   :  { %1374 = vpow2.f32 %v972_v26 }
 0x3b9   :  { %v1373_v1 = vpop.eup %1372 }
 0x3ba   :  { %974 = vadd.xlane.f32.xlu1 %v1373_v1 }
 0x3bd   :  { %v1375_v2 = vpop.eup %1374 }
 0x3be   :  { %976 = vadd.xlane.f32.xlu1 %v1375_v2 }
 0x447   :  { %v975_v3 = vpop.xlane.xlu1 %974 }
 0x448   :  { %1376 = vlog2.f32 %v975_v3 }
 0x44b   :  { %v977_v4 = vpop.xlane.xlu1 %976 }
 0x44c   :  { %1378 = vlog2.f32 %v977_v4 }
 0x452   :  { %v1377_v5 = vpop.eup %1376 }
 0x453   :  { %v979_v6 = vmul.f32 0.6931472, %v1377_v5 }
 0x455   :  { %v982_v7 = vsub.f32 %v968_v61, %v979_v6 }
 0x456   :  { %v1379_v8 = vpop.eup %1378 }
 0x457   :  { %984 = vst [vmem:[#allocation10] sm:$0xff] %v982_v7  ;;  %v981_v9 = vmul.f32 0.6931472, %v1379_v8 }
 0x459   :  { %v983_v10 = vsub.f32 %v969_v0, %v981_v9 }
 0x45b   :  { %985 = vst [vmem:[#allocation10 + $0x8] sm:$0xff] %v983_v10 }
 0x45c   :  { %990 = vsyncadd [#allocation4], 224  ;;  %s1509_s4 = smov [#allocation10]  }
 0x45d   :  { %s991_s6 = sshll.u32 %s1509_s4, 4  ;;  %s992_s6 = int_to_ptr.vmem [resolvable:$true] %s991_s6 }
 0x45e   :  { %s1468_s10 = scalar_lea.vmem %s992_s6, 32  ;;  %s1472_s11 = scalar_lea.vmem %s992_s6, 256 }
 0x45f   :  { %p1469_p4 = scmp.ne.s32.totalorder %s992_s6, %s1468_s10  ;;  %p1473_p5 = scmp.lt.s32.totalorder %s992_s6, %s992_s6 }
 0x460   :  { %p1474_p6 = scmp.lt.s32.totalorder %s1472_s11, %s1468_s10 }
 0x462   :  { %p1475_p7 = por %p1474_p6, %p1473_p5 }
 0x464   :  { %p1476_p8 = pnand %p1475_p7, %p1469_p4 }
 0x466   :  { %1479 = shalt.err (!%p1476_p8)
}
 0x467   :  { %s1480_s14 = scalar_lea.hbm %s1644_s7, 32 }
 0x468   :  { %p1481_p9 = scmp.ne.s32.totalorder %s1644_s7, %s1480_s14  ;;  %p1484_p10 = scmp.lt.u32.totalorder %s1480_s14, %s1644_s7 }
 0x46a   :  { %p1486_p11 = pnand %p1484_p10, %p1481_p9 }
 0x46c   :  { %1489 = shalt.err (!%p1486_p11)
}
 0x46d   :  { %s1510_s18 = smov 32   ;;  %s1511_s19 = smov 2  }
 0x46e   :  { %997 = dma.vmem_to_hbm [thread:$0]  %s992_s6, 32, %s1644_s7, [#allocation4], %s1510_s18, %s1510_s18, %s1511_s19  }
 0x46f   :  { %1496 = dma.done.wait [#allocation4], 256  }
 0x470   :  { %1497 = vsyncadd [#allocation4], 4294967040 }
 0x471   :  { %1001 = vsyncpa [#allocation3], 1 }
 0x472   :  { %1002 = vsyncpa [#allocation6], 1 }
 0x473   :  { %1003 = vsyncpa [#allocation9], 1 }
 0x474   :  { %1004 = vsyncpa [#allocation4], 1 }

</bundles_post_ra>
